<compile_context>
chip_gen: v5e
topology: v5e:2x2
jax: 0.10.0
libtpu: 0.0.40
codegen_flags: <defaults>
</compile_context>

<pallas_src>
import functools

import jax
import jax.numpy as jnp
from jax.experimental import pallas as pl
from jax.experimental.pallas import tpu as pltpu

INPUT_SIZE = 784
HIDDEN = 50
NUM_CLASSES = 10

H_PAD = 128     # hidden dim padded to one full lane tile
OUT_PAD = 128   # output dim padded to one full lane tile (lane-dense stores)


def _round_up(x, m):
    return ((x + m - 1) // m) * m


def mlp_kernel(x_ref, w1_ref, b1_ref, w2_ref, b2_ref, o_ref):
    # x_ref: (TB, 784) bf16   w1_ref: (784, 128) bf16   b1_ref: (1, 128) f32
    # w2_ref: (128, 128) f32  b2_ref: (1, 128) f32      o_ref: (TB, 128) f32
    x = x_ref[...]
    h = jnp.dot(x, w1_ref[...], preferred_element_type=jnp.float32)   # MXU
    h = jnp.maximum(h + b1_ref[...], 0.0)                             # VPU (f32)
    y = jnp.dot(h, w2_ref[...], preferred_element_type=jnp.float32)   # MXU
    o_ref[...] = (y + b2_ref[...]).astype(o_ref.dtype)                # unmasked vst


@functools.partial(jax.jit, static_argnames=("tb",))
def nn_forward(x, w1, b1, w2, b2, *, tb=512):
    """x: (B, 784) f32; w1: (784, 50); b1: (1, 50); w2: (50, 10); b2: (1, 10)."""
    B = x.shape[0]

    # --- pad lane dims to 128 (zeros keep the math exact) ---------------------
    w1p = jnp.pad(w1.astype(jnp.bfloat16), ((0, 0), (0, H_PAD - HIDDEN)))
    b1p = jnp.pad(b1.reshape(1, HIDDEN).astype(jnp.float32),
                  ((0, 0), (0, H_PAD - HIDDEN)))
    w2p = jnp.pad(w2.astype(jnp.float32),
                  ((0, H_PAD - HIDDEN), (0, OUT_PAD - NUM_CLASSES)))
    b2p = jnp.pad(b2.reshape(1, NUM_CLASSES).astype(jnp.float32),
                  ((0, 0), (0, OUT_PAD - NUM_CLASSES)))

    # --- pick batch tile & pad batch to a multiple of it ----------------------
    TB = tb if B >= tb else _round_up(B, 8)
    B_pad = _round_up(B, TB)
    xp = x.astype(jnp.bfloat16)
    if B_pad != B:
        xp = jnp.pad(xp, ((0, B_pad - B), (0, 0)))

    grid = (B_pad // TB,)

    cost = pl.CostEstimate(
        flops=2 * B_pad * (INPUT_SIZE * H_PAD + H_PAD * OUT_PAD),
        transcendentals=0,
        bytes_accessed=(xp.size * 2                       # bf16 x
                        + w1p.size * 2                    # bf16 W1
                        + (b1p.size + w2p.size + b2p.size) * 4
                        + B_pad * OUT_PAD * 4),           # f32 out
    )

    out_padded = pl.pallas_call(
        mlp_kernel,
        out_shape=jax.ShapeDtypeStruct((B_pad, OUT_PAD), jnp.float32),
        grid=grid,
        in_specs=[
            pl.BlockSpec((TB, INPUT_SIZE), lambda i: (i, 0)),      # x: tiled
            pl.BlockSpec((INPUT_SIZE, H_PAD), lambda i: (0, 0)),   # W1: resident
            pl.BlockSpec((1, H_PAD), lambda i: (0, 0)),            # b1: resident
            pl.BlockSpec((H_PAD, OUT_PAD), lambda i: (0, 0)),      # W2: resident
            pl.BlockSpec((1, OUT_PAD), lambda i: (0, 0)),          # b2: resident
        ],
        out_specs=pl.BlockSpec((TB, OUT_PAD), lambda i: (i, 0)),
        compiler_params=pltpu.CompilerParams(
            dimension_semantics=("parallel",)),
        cost_estimate=cost,
    )(xp, w1p, b1p, w2p, b2p)

    # Slice away batch + lane padding in the wrapper (layout plumbing only).
    return out_padded[:B, :NUM_CLASSES]


def init_params(key):
    # Mimics PyTorch's default Linear init: U(-1/sqrt(fan_in), 1/sqrt(fan_in)).
    k1, k2, k3, k4 = jax.random.split(key, 4)
    bound1 = 1.0 / jnp.sqrt(INPUT_SIZE)
    bound2 = 1.0 / jnp.sqrt(HIDDEN)
    w1 = jax.random.uniform(k1, (INPUT_SIZE, HIDDEN), jnp.float32,
                            minval=-bound1, maxval=bound1)
    b1 = jax.random.uniform(k2, (1, HIDDEN), jnp.float32,
                            minval=-bound1, maxval=bound1)
    w2 = jax.random.uniform(k3, (HIDDEN, NUM_CLASSES), jnp.float32,
                            minval=-bound2, maxval=bound2)
    b2 = jax.random.uniform(k4, (1, NUM_CLASSES), jnp.float32,
                            minval=-bound2, maxval=bound2)
    return w1, b1, w2, b2


if __name__ == "__main__":
    key = jax.random.PRNGKey(0)
    k_x, k_p = jax.random.split(key)

    B = 8  # small test batch
    x = jax.random.normal(k_x, (B, INPUT_SIZE), jnp.float32)
    w1, b1, w2, b2 = init_params(k_p)

    out = nn_forward(x, w1, b1, w2, b2)
    out = jax.block_until_ready(out)

    # Reference with the same bf16 rounding applied to x / W1 (f32 accumulation).
    xb = x.astype(jnp.bfloat16).astype(jnp.float32)
    w1b = w1.astype(jnp.bfloat16).astype(jnp.float32)
    ref = jnp.maximum(xb @ w1b + b1, 0.0) @ w2 + b2

    assert out.shape == (B, NUM_CLASSES)
    assert jnp.allclose(out, ref, atol=1e-2, rtol=1e-2), (
        float(jnp.max(jnp.abs(out - ref))))

    print("KERNEL_OK")
</pallas_src>

<mosaic_0001>
module attributes {stable_mosaic.version = 11 : i64} {
  func.func @mlp_kernel(%arg0: i32, %arg1: memref<8x784xbf16, #tpu.memory_space<vmem>>, %arg2: memref<784x128xbf16, #tpu.memory_space<vmem>>, %arg3: memref<1x128xf32, #tpu.memory_space<vmem>>, %arg4: memref<128x128xf32, #tpu.memory_space<vmem>>, %arg5: memref<1x128xf32, #tpu.memory_space<vmem>>, %arg6: memref<8x128xf32, #tpu.memory_space<vmem>>) attributes {dimension_semantics = [#tpu.dimension_semantics<parallel>], iteration_bounds = array<i64: 1>, scalar_prefetch = 0 : i64, scratch_operands = 0 : i64, tpu.core_type = #tpu.core_type<tc>, window_params = [{transform_indices = @transform_0, window_bounds = array<i64: 8, 784>}, {pipeline_mode = #tpu.pipeline_mode<synchronous>, transform_indices = @transform_1, window_bounds = array<i64: 784, 128>}, {pipeline_mode = #tpu.pipeline_mode<synchronous>, transform_indices = @transform_2, window_bounds = array<i64: 1, 128>}, {pipeline_mode = #tpu.pipeline_mode<synchronous>, transform_indices = @transform_3, window_bounds = array<i64: 128, 128>}, {pipeline_mode = #tpu.pipeline_mode<synchronous>, transform_indices = @transform_4, window_bounds = array<i64: 1, 128>}, {transform_indices = @transform_5, window_bounds = array<i64: 8, 128>}]} {
    %c0 = arith.constant 0 : index
    %c0_0 = arith.constant 0 : index
    %0 = vector.load %arg1[%c0, %c0_0] : memref<8x784xbf16, #tpu.memory_space<vmem>>, vector<8x784xbf16>
    %c0_1 = arith.constant 0 : index
    %c0_2 = arith.constant 0 : index
    %1 = vector.load %arg2[%c0_1, %c0_2] : memref<784x128xbf16, #tpu.memory_space<vmem>>, vector<784x128xbf16>
    %cst = arith.constant dense<0.000000e+00> : vector<8x128xf32>
    %2 = tpu.matmul %0, %1, %cst {dimension_numbers = #tpu.dot_dimension_numbers<[1], [0], [0], [1], [0, 0, 1, 1], [], []>} : vector<8x784xbf16>, vector<784x128xbf16>, vector<8x128xf32> -> vector<8x128xf32>
    %c0_3 = arith.constant 0 : index
    %c0_4 = arith.constant 0 : index
    %3 = vector.load %arg3[%c0_3, %c0_4] : memref<1x128xf32, #tpu.memory_space<vmem>>, vector<1x128xf32>
    %4 = vector.broadcast %3 : vector<1x128xf32> to vector<8x128xf32>
    %5 = arith.addf %2, %4 : vector<8x128xf32>
    %cst_5 = arith.constant 0.000000e+00 : f32
    %6 = vector.broadcast %cst_5 : f32 to vector<8x128xf32>
    %7 = arith.maximumf %5, %6 : vector<8x128xf32>
    %c0_6 = arith.constant 0 : index
    %c0_7 = arith.constant 0 : index
    %8 = vector.load %arg4[%c0_6, %c0_7] : memref<128x128xf32, #tpu.memory_space<vmem>>, vector<128x128xf32>
    %cst_8 = arith.constant dense<0.000000e+00> : vector<8x128xf32>
    %9 = tpu.matmul %7, %8, %cst_8 {dimension_numbers = #tpu.dot_dimension_numbers<[1], [0], [0], [1], [0, 0, 1, 1], [], []>} : vector<8x128xf32>, vector<128x128xf32>, vector<8x128xf32> -> vector<8x128xf32>
    %c0_9 = arith.constant 0 : index
    %c0_10 = arith.constant 0 : index
    %10 = vector.load %arg5[%c0_9, %c0_10] : memref<1x128xf32, #tpu.memory_space<vmem>>, vector<1x128xf32>
    %11 = vector.broadcast %10 : vector<1x128xf32> to vector<8x128xf32>
    %12 = arith.addf %9, %11 : vector<8x128xf32>
    %c0_11 = arith.constant 0 : index
    %c0_12 = arith.constant 0 : index
    %13 = vector.load %arg6[%c0_11, %c0_12] : memref<8x128xf32, #tpu.memory_space<vmem>>, vector<8x128xf32>
    tpu.vector_store %arg6[%c0_11, %c0_12], %12 {strides = array<i32>} : memref<8x128xf32, #tpu.memory_space<vmem>>, vector<8x128xf32>,
    return
  }
  func.func @transform_0(%arg0: i32) -> (i32, i32) {
    %c0_i32 = arith.constant 0 : i32
    %c0_i32_0 = arith.constant 0 : i32
    return %arg0, %c0_i32 : i32, i32
  }
  func.func @transform_1(%arg0: i32) -> (i32, i32) {
    %c0_i32 = arith.constant 0 : i32
    %c0_i32_0 = arith.constant 0 : i32
    %c0_i32_1 = arith.constant 0 : i32
    return %c0_i32, %c0_i32_0 : i32, i32
  }
  func.func @transform_2(%arg0: i32) -> (i32, i32) {
    %c0_i32 = arith.constant 0 : i32
    %c0_i32_0 = arith.constant 0 : i32
    %c0_i32_1 = arith.constant 0 : i32
    return %c0_i32, %c0_i32_0 : i32, i32
  }
  func.func @transform_3(%arg0: i32) -> (i32, i32) {
    %c0_i32 = arith.constant 0 : i32
    %c0_i32_0 = arith.constant 0 : i32
    %c0_i32_1 = arith.constant 0 : i32
    return %c0_i32, %c0_i32_0 : i32, i32
  }
  func.func @transform_4(%arg0: i32) -> (i32, i32) {
    %c0_i32 = arith.constant 0 : i32
    %c0_i32_0 = arith.constant 0 : i32
    %c0_i32_1 = arith.constant 0 : i32
    return %c0_i32, %c0_i32_0 : i32, i32
  }
  func.func @transform_5(%arg0: i32) -> (i32, i32) {
    %c0_i32 = arith.constant 0 : i32
    %c0_i32_0 = arith.constant 0 : i32
    return %arg0, %c0_i32 : i32, i32
  }
}

</mosaic_0001>

<bundles_post_ra>
// kernel: nn_forward.1
= control target key start
LH: loop header
LB: loop body
LE: loop exit
PB: predicated region body
PF: predicated region fallthrough
CT: control target
= control target key end

     0   :  { %s1121_s0 = inlined_call_operand.vmem [shape: bf16[8,784], index: 0, kind: input, shape index: {}]   ;;  %s1122_s1 = inlined_call_operand.vmem [shape: bf16[784,128], index: 1, kind: input, shape index: {}]   ;;  %s1123_s2 = inlined_call_operand.vmem [shape: f32[1,128], index: 2, kind: input, shape index: {}]   ;;  %s1124_s3 = inlined_call_operand.vmem [shape: f32[128,128], index: 3, kind: input, shape index: {}]   ;;  %s1125_s4 = inlined_call_operand.vmem [shape: f32[1,128], index: 4, kind: input, shape index: {}]   ;;  %s1126_s5 = inlined_call_operand.hbm [shape: f32[8,128], index: 5, kind: output, shape index: {}]  }
   0x1   :  { %v803_v0 = vld [vmem:[%s1122_s1 + $0x38] sm:$0xff]  ;;  %v802_v3 = vld [vmem:[%s1122_s1 + $0x30] sm:$0xff]  ;;  %v801_v8 = vld [vmem:[%s1122_s1 + $0x28] sm:$0xff] }
   0x2   :  { %v811_v1 = vld [vmem:[%s1122_s1 + $0x78] sm:$0xff]  ;;  %450 = vmatpush.bf16.msra.mxu0 %v803_v0  ;;  %v810_v4 = vld [vmem:[%s1122_s1 + $0x70] sm:$0xff]  ;;  %v809_v9 = vld [vmem:[%s1122_s1 + $0x68] sm:$0xff] }
   0x3   :  { %v819_v2 = vld [vmem:[%s1122_s1 + $0xb8] sm:$0xff]  ;;  %463 = vmatpush.bf16.msra.mxu1 %v811_v1  ;;  %v818_v5 = vld [vmem:[%s1122_s1 + $0xb0] sm:$0xff]  ;;  %v817_v10 = vld [vmem:[%s1122_s1 + $0xa8] sm:$0xff] }
   0x4   :  { %476 = vmatpush.bf16.msra.mxu2 %v819_v2  ;;  %v827_v6 = vld [vmem:[%s1122_s1 + $0xf8] sm:$0xff]  ;;  %v826_v7 = vld [vmem:[%s1122_s1 + $0xf0] sm:$0xff]  ;;  %v825_v11 = vld [vmem:[%s1122_s1 + $0xe8] sm:$0xff] }
   0x5   :  { %489 = vmatpush.bf16.msra.mxu3 %v827_v6  ;;  %v800_v12 = vld [vmem:[%s1122_s1 + $0x20] sm:$0xff]  ;;  %v799_v16 = vld [vmem:[%s1122_s1 + $0x18] sm:$0xff] }
   0x6   :  { %451 = vmatpush.bf16.msra.mxu0 %v802_v3  ;;  %v808_v13 = vld [vmem:[%s1122_s1 + $0x60] sm:$0xff]  ;;  %v807_v17 = vld [vmem:[%s1122_s1 + $0x58] sm:$0xff] }
   0x7   :  { %464 = vmatpush.bf16.msra.mxu1 %v810_v4  ;;  %v816_v14 = vld [vmem:[%s1122_s1 + $0xa0] sm:$0xff]  ;;  %v815_v18 = vld [vmem:[%s1122_s1 + $0x98] sm:$0xff] }
   0x8   :  { %477 = vmatpush.bf16.msra.mxu2 %v818_v5  ;;  %v824_v15 = vld [vmem:[%s1122_s1 + $0xe0] sm:$0xff] }
   0x9   :  { %490 = vmatpush.bf16.msra.mxu3 %v826_v7 }
   0xa   :  { %452 = vmatpush.bf16.msra.mxu0 %v801_v8 }
   0xb   :  { %465 = vmatpush.bf16.msra.mxu1 %v809_v9 }
   0xc   :  { %478 = vmatpush.bf16.msra.mxu2 %v817_v10 }
   0xd   :  { %491 = vmatpush.bf16.msra.mxu3 %v825_v11 }
   0xe   :  { %453 = vmatpush.bf16.msra.mxu0 %v800_v12 }
   0xf   :  { %466 = vmatpush.bf16.msra.mxu1 %v808_v13 }
  0x10   :  { %479 = vmatpush.bf16.msra.mxu2 %v816_v14 }
  0x11   :  { %10 = vsyncpa [#allocation3], 0  ;;  %492 = vmatpush.bf16.msra.mxu3 %v824_v15  ;;  %v823_v19 = vld [vmem:[%s1122_s1 + $0xd8] sm:$0xff]  ;;  %v798_v20 = vld [vmem:[%s1122_s1 + $0x10] sm:$0xff]  ;;  %vm446_vm0 = vcmask 130048   ;;  %s590_s8 = sshll.u32 %s1126_s5, 4  ;;  %s591_s8 = int_to_ptr.hbm [resolvable:$true] %s590_s8 }
  0x12   :  { %454 = vmatpush.bf16.msra.mxu0 %v799_v16  ;;  %v806_v21 = vld [vmem:[%s1122_s1 + $0x50] sm:$0xff]  ;;  %v797_v24 = vld [vmem:[%s1122_s1 + $0x8] sm:$0xff]  ;;  %v22_v26 = vld [vmem:[%s1121_s0] sm:$0xff] }
  0x13   :  { %467 = vmatpush.bf16.msra.mxu1 %v807_v17  ;;  %v814_v22 = vld [vmem:[%s1122_s1 + $0x90] sm:$0xff]  ;;  %v805_v25 = vld [vmem:[%s1122_s1 + $0x48] sm:$0xff]  ;;  %v132_v29 = vunpack.c.l.b16 %v22_v26  ;;  %v133_v31 = vunpack.c.h.b16 %v22_v26  ;;  %v796_v32 = vld [vmem:[%s1122_s1] sm:$0xff] }
  0x14   :  { %480 = vmatpush.bf16.msra.mxu2 %v815_v18  ;;  %v822_v23 = vld [vmem:[%s1122_s1 + $0xd0] sm:$0xff]  ;;  %v813_v27 = vld [vmem:[%s1122_s1 + $0x88] sm:$0xff]  ;;  %v804_v33 = vld [vmem:[%s1122_s1 + $0x40] sm:$0xff] }
  0x15   :  { %493 = vmatpush.bf16.msra.mxu3 %v823_v19  ;;  %v23_v28 = vld [vmem:[%s1121_s0 + $0x8] sm:$0xff]  ;;  %v835_v34 = vld [vmem:[%s1122_s1 + $0x138] sm:$0xff]  ;;  %v812_v36 = vld [vmem:[%s1122_s1 + $0x80] sm:$0xff]  ;;  %v139_v38 = vpack.c.b16 %v132_v29, %v132_v29  ;;  %v140_v39 = vpack.c.b16 %v133_v31, %v133_v31 }
  0x16   :  { %455 = vmatpush.bf16.msra.mxu0 %v798_v20  ;;  %v821_v30 = vld [vmem:[%s1122_s1 + $0xc8] sm:$0xff]  ;;  %v843_v35 = vld [vmem:[%s1122_s1 + $0x178] sm:$0xff]  ;;  %v134_v37 = vunpack.c.l.b16 %v23_v28  ;;  %v135_v40 = vunpack.c.h.b16 %v23_v28  ;;  %v820_v41 = vld [vmem:[%s1122_s1 + $0xc0] sm:$0xff] }
  0x17   :  { %468 = vmatpush.bf16.msra.mxu1 %v806_v21  ;;  %v844_v42 = vld [vmem:[%s1122_s1 + $0x180] sm:$0xff]  ;;  %v834_v43 = vld [vmem:[%s1122_s1 + $0x130] sm:$0xff]  ;;  %v833_v47 = vld [vmem:[%s1122_s1 + $0x128] sm:$0xff] }
  0x18   :  { %481 = vmatpush.bf16.msra.mxu2 %v814_v22  ;;  %v842_v44 = vld [vmem:[%s1122_s1 + $0x170] sm:$0xff]  ;;  %v141_v45 = vpack.c.b16 %v134_v37, %v134_v37  ;;  %v142_v46 = vpack.c.b16 %v135_v40, %v135_v40  ;;  %v841_v48 = vld [vmem:[%s1122_s1 + $0x168] sm:$0xff]  ;;  %v832_v49 = vld [vmem:[%s1122_s1 + $0x120] sm:$0xff] }
  0x19   :  { %494 = vmatpush.bf16.msra.mxu3 %v822_v23  ;;  %v840_v50 = vld [vmem:[%s1122_s1 + $0x160] sm:$0xff]  ;;  %v25_v51 = vld [vmem:[%s1121_s0 + $0x18] sm:$0xf]  ;;  %v830_v55 = vld [vmem:[%s1122_s1 + $0x110] sm:$0xff] }
  0x1a   :  { %456 = vmatpush.bf16.msra.mxu0 %v797_v24  ;;  %v831_v52 = vld [vmem:[%s1122_s1 + $0x118] sm:$0xff]  ;;  %v138_v54 = vunpack.c.l.b16 %v25_v51  ;;  %v838_v56 = vld [vmem:[%s1122_s1 + $0x150] sm:$0xff]  ;;  %v829_v58 = vld [vmem:[%s1122_s1 + $0x108] sm:$0xff] }
  0x1b   :  { %469 = vmatpush.bf16.msra.mxu1 %v805_v25  ;;  %v839_v53 = vld [vmem:[%s1122_s1 + $0x158] sm:$0xff]  ;;  %v837_v59 = vld [vmem:[%s1122_s1 + $0x148] sm:$0xff]  ;;  %v24_v60 = vld [vmem:[%s1121_s0 + $0x10] sm:$0xff] }
  0x1c   :  { %482 = vmatpush.bf16.msra.mxu2 %v813_v27  ;;  %v145_v57 = vpack.c.b16 %v138_v54, %v138_v54  ;;  %v136_v61 = vunpack.c.l.b16 %v24_v60  ;;  %v137_v62 = vunpack.c.h.b16 %v24_v60  ;;  %v828_v63 = vld [vmem:[%s1122_s1 + $0x100] sm:$0xff]  ;;  %v557_v3 = vld [vmem:[%s1124_s3 + $0x78] sm:$0xff]  ;;  %v556_v4 = vld [vmem:[%s1124_s3 + $0x70] sm:$0xff] }
  0x1d   :  { %495 = vmatpush.bf16.msra.mxu3 %v821_v30  ;;  %v836_v0 = vld [vmem:[%s1122_s1 + $0x140] sm:$0xff]  ;;  %v555_v5 = vld [vmem:[%s1124_s3 + $0x68] sm:$0xff]  ;;  %v553_v7 = vld [vmem:[%s1124_s3 + $0x58] sm:$0xff] }
  0x1e   :  { %457 = vmatpush.bf16.msra.mxu0 %v796_v32  ;;  %v143_v1 = vpack.c.b16 %v136_v61, %v136_v61  ;;  %v144_v2 = vpack.c.b16 %v137_v62, %v137_v62  ;;  %v554_v6 = vld [vmem:[%s1124_s3 + $0x60] sm:$0xff]  ;;  %v552_v8 = vld [vmem:[%s1124_s3 + $0x50] sm:$0xff]  ;;  %v551_v9 = vld [vmem:[%s1124_s3 + $0x48] sm:$0xff] }
  0x1f   :  { %470 = vmatpush.bf16.msra.mxu1 %v804_v33  ;;  %v550_v10 = vld [vmem:[%s1124_s3 + $0x40] sm:$0xff]  ;;  %v549_v11 = vld [vmem:[%s1124_s3 + $0x38] sm:$0xff]  ;;  %v548_v12 = vld [vmem:[%s1124_s3 + $0x30] sm:$0xff] }
  0x20   :  { %483 = vmatpush.bf16.msra.mxu2 %v812_v36  ;;  %v547_v13 = vld [vmem:[%s1124_s3 + $0x28] sm:$0xff]  ;;  %v546_v14 = vld [vmem:[%s1124_s3 + $0x20] sm:$0xff]  ;;  %v545_v15 = vld [vmem:[%s1124_s3 + $0x18] sm:$0xff] }
  0x21   :  { %458 = vmatmul.bf16.vlgmr.msra.gmra.mxu0 %v139_v38  ;;  %496 = vmatpush.bf16.msra.mxu3 %v820_v41  ;;  %v544_v18 = vld [vmem:[%s1124_s3 + $0x10] sm:$0xff]  ;;  %v543_v19 = vld [vmem:[%s1124_s3 + $0x8] sm:$0xff]  ;;  %v542_v20 = vld [vmem:[%s1124_s3] sm:$0xff] }
  0x22   :  { %502 = vmatpush.bf16.msrb.mxu0 %v835_v34  ;;  %471 = vmatmul.bf16.vlgmr.msra.gmra.mxu1 %v140_v39  ;;  %v846_v25 = vld [vmem:[%s1123_s2] ss:$0 sm:$0xff]  ;;  %s874_s2 = smov [#allocation2]  }
  0x23   :  { %515 = vmatpush.bf16.msrb.mxu1 %v843_v35  ;;  %484 = vmatmul.bf16.vlgmr.msra.gmra.mxu2 %v141_v45  ;;  %s588_s30 = sshll.u32 %s874_s2, 4  ;;  %s589_s30 = int_to_ptr.vmem [resolvable:$true] %s588_s30 }
  0x24   :  { %535 = vmatpush.bf16.msrb.mxu2 %v844_v42  ;;  %497 = vmatmul.bf16.vlgmr.msra.gmra.mxu3 %v142_v46  ;;  %v847_v42 = vld [vmem:[%s1125_s4] ss:$0 sm:$0xff] }
  0x25   :  { %562 = vmatpush.msrb.mxu3 %v557_v3 }
  0x26   :  { %503 = vmatpush.bf16.msrb.mxu0 %v834_v43 }
  0x27   :  { %516 = vmatpush.bf16.msrb.mxu1 %v842_v44  ;;  %563 = vmatpush.msrb.mxu3 %v556_v4 }
  0x29   :  { %564 = vmatpush.msrb.mxu3 %v555_v5 }
  0x2a   :  { %504 = vmatpush.bf16.msrb.mxu0 %v833_v47 }
  0x2b   :  { %517 = vmatpush.bf16.msrb.mxu1 %v841_v48  ;;  %565 = vmatpush.msrb.mxu3 %v554_v6 }
  0x2d   :  { %566 = vmatpush.msrb.mxu3 %v553_v7 }
  0x2e   :  { %505 = vmatpush.bf16.msrb.mxu0 %v832_v49 }
  0x2f   :  { %518 = vmatpush.bf16.msrb.mxu1 %v840_v50  ;;  %567 = vmatpush.msrb.mxu3 %v552_v8 }
  0x31   :  { %568 = vmatpush.msrb.mxu3 %v551_v9 }
  0x32   :  { %506 = vmatpush.bf16.msrb.mxu0 %v831_v52 }
  0x33   :  { %519 = vmatpush.bf16.msrb.mxu1 %v839_v53  ;;  %795 = vmatmul.msk.bf16.vlgmr.msrb.gmra.mxu2 %vm446_vm0, %v145_v57 }
  0x34   :  { %569 = vmatpush.msrb.mxu3 %v550_v10 }
  0x36   :  { %507 = vmatpush.bf16.msrb.mxu0 %v830_v55  ;;  %570 = vmatpush.msrb.mxu3 %v549_v11 }
  0x37   :  { %520 = vmatpush.bf16.msrb.mxu1 %v838_v56 }
  0x38   :  { %571 = vmatpush.msrb.mxu3 %v548_v12 }
  0x3a   :  { %508 = vmatpush.bf16.msrb.mxu0 %v829_v58  ;;  %572 = vmatpush.msrb.mxu3 %v547_v13 }
  0x3b   :  { %521 = vmatpush.bf16.msrb.mxu1 %v837_v59 }
  0x3c   :  { %573 = vmatpush.msrb.mxu3 %v546_v14 }
  0x3e   :  { %509 = vmatpush.bf16.msrb.mxu0 %v828_v63  ;;  %574 = vmatpush.msrb.mxu3 %v545_v15 }
  0x3f   :  { %522 = vmatpush.bf16.msrb.mxu1 %v836_v0 }
  0x40   :  { %575 = vmatpush.msrb.mxu3 %v544_v18 }
  0x41   :  { %510 = vmatmul.bf16.vlgmr.msrb.gmra.mxu0 %v143_v1 }
  0x42   :  { %523 = vmatmul.bf16.vlgmr.msrb.gmra.mxu1 %v144_v2  ;;  %576 = vmatpush.msrb.mxu3 %v543_v19 }
  0x44   :  { %577 = vmatpush.msrb.mxu3 %v542_v20 }
  0x9e   :  { %v459_v16 = vpop.f32.mrf.mxu0 }
  0x9f   :  { %v472_v17 = vpop.f32.mrf.mxu1  ;;  %v460_v26 = vadd.f32 %v846_v25, %v459_v16 }
  0xa1   :  { %v473_v29 = vadd.f32 %v472_v17, %v460_v26 }
  0xa6   :  { %v461_v21 = vpop.f32.mrf.mxu0  ;;  %v485_v23 = vpop.f32.mrf.mxu2 }
  0xa7   :  { %v474_v22 = vpop.f32.mrf.mxu1  ;;  %v498_v24 = vpop.f32.mrf.mxu3  ;;  %v486_v30 = vadd.f32 %v485_v23, %v473_v29 }
  0xa9   :  { %v499_v32 = vadd.f32 %v498_v24, %v486_v30 }
  0xae   :  { %v487_v27 = vpop.f32.mrf.mxu2 }
  0xaf   :  { %v500_v28 = vpop.f32.mrf.mxu3 }
  0xb6   :  { %v537_v31 = vpop.f32.mrf.mxu2 }
  0xbe   :  { %v511_v33 = vpop.f32.mrf.mxu0  ;;  %v539_v37 = vpop.f32.mrf.mxu2 }
  0xbf   :  { %v524_v34 = vpop.f32.mrf.mxu1  ;;  %v512_v35 = vadd.f32 %v511_v33, %v499_v32 }
  0xc1   :  { %v525_v36 = vadd.f32 %v524_v34, %v512_v35 }
  0xc3   :  { %v538_v38 = vadd.f32 %v537_v31, %v525_v36 }
  0xc5   :  { %v541_v39 = vmax.f32 %v538_v38, 0.0 }
  0xc6   :  { %v513_v40 = vpop.f32.mrf.mxu0 }
  0xc7   :  { %v526_v41 = vpop.f32.mrf.mxu1  ;;  %578 = vmatmul.f32.vlgmr.msrb.gmra.mxu3 %v541_v39 }
 0x14a   :  { %v579_v43 = vpop.f32.mrf.mxu3 }
 0x14b   :  { %v580_v44 = vadd.f32 %v847_v42, %v579_v43 }
 0x14d   :  { %582 = vst [vmem:[#allocation2] sm:$0xff] %v580_v44 }
 0x14e   :  { %593 = dma.vmem_to_hbm [thread:$0]  %s589_s30, 128, %s591_s8, [#allocation3]  }
 0x14f   :  { %872 = dma.done.wait [#allocation3], 128  }
 0x150   :  { %873 = vsyncadd [#allocation3], 4294967168 }
 0x151   :  { %598 = vsyncpa [#allocation3], 1 }

</bundles_post_ra>
